<compile_context>
chip_gen: v5e
topology: v5e:2x2
jax: 0.10.0
libtpu: 0.0.40
codegen_flags: <defaults>
</compile_context>

<pallas_src>
import jax
import jax.numpy as jnp
from jax import lax
from jax.experimental import pallas as pl
from jax.experimental.pallas import tpu as pltpu

KERNEL_SIZE = 7
PAD = (KERNEL_SIZE - 1) // 2
HALO = 128  # lane-aligned halo block; only PAD=3 of its columns are actually used


def _fused_kernel(x_ref, xl_ref, xr_ref, w_ref, o_ref):
    # x_ref : (1, C, TL)    main x tile (model dtype)
    # xl_ref: (1, C, HALO)  x columns [t*TL-HALO, t*TL)          (clamped at t == 0)
    # xr_ref: (1, C, HALO)  x columns [(t+1)*TL, (t+1)*TL+HALO)  (clamped at t == last)
    # w_ref : (2, K)        Conv1d(2, 1, K, bias=False) weight, squeezed
    # o_ref : (1, C, TL)
    tl = o_ref.shape[2]
    t = pl.program_id(1)
    last = pl.num_programs(1) - 1

    x = x_ref[0]                                       # (C, TL) model dtype
    xf = x.astype(jnp.float32)

    def reduce_cm(v):                                  # channel-wise mean & max -> (2, n)
        avg = jnp.mean(v, axis=0, keepdims=True)
        mx = jnp.max(v, axis=0, keepdims=True)
        return jnp.concatenate([avg, mx], axis=0)

    xl = xl_ref[0]                                     # (C, HALO)
    xr = xr_ref[0]                                     # (C, HALO)
    red_m = reduce_cm(xf)                                          # (2, TL)
    red_l = reduce_cm(xl[:, HALO - PAD:].astype(jnp.float32))      # (2, PAD)
    red_r = reduce_cm(xr[:, :PAD].astype(jnp.float32))             # (2, PAD)

    # Zero the halos at the sequence edges -> identical to the Conv1d zero padding.
    red_l = jnp.where(t == 0, 0.0, red_l)
    red_r = jnp.where(t == last, 0.0, red_r)

    rp = jnp.concatenate([red_l, red_m, red_r], axis=1)            # (2, TL + 2*PAD)

    w = w_ref[...].astype(jnp.float32)                             # (2, K)
    acc = jnp.zeros((2, tl), jnp.float32)
    for k in range(KERNEL_SIZE):                                   # 7 static taps, no masks
        acc = acc + rp[:, k:k + tl] * w[:, k:k + 1]                # (2,1) weight-column FMA
    conv = jnp.sum(acc, axis=0, keepdims=True)                     # (1, TL) single sublane sum
    attn = jax.nn.sigmoid(conv).astype(o_ref.dtype)                # sigmoid on EUP

    o_ref[0] = x * attn                                            # broadcast over C, model dtype


def spatial_attention(x, w, *, tile_l=1024):
    """x: (N, C, L); w: (2, K) = nn.Conv1d(2, 1, K, bias=False).weight squeezed."""
    N, C, L = x.shape
    assert w.shape == (2, KERNEL_SIZE)
    assert tile_l % 128 == 0 and tile_l >= 128

    # Lane-align L and pick an L-tile (multiple of 128, capped by tile_l).
    # Per-step VMEM ~ 4 * C * tile_l * bytes (x + out, double-buffered) + small halos;
    # lower tile_l for very large C, raise it for long L (sweepable).
    tl = min(tile_l, ((L + 127) // 128) * 128)
    n_t = pl.cdiv(L, tl)
    lp = n_t * tl
    blk = tl // HALO                      # HALO-sized blocks per tile
    n_blk = lp // HALO                    # total HALO-sized blocks along L

    x_p = jnp.pad(x, ((0, 0), (0, 0), (0, lp - L))) if lp != L else x

    out_p = pl.pallas_call(
        _fused_kernel,
        out_shape=jax.ShapeDtypeStruct((N, C, lp), x.dtype),
        grid=(N, n_t),
        in_specs=[
            # main tile
            pl.BlockSpec((1, C, tl), lambda b, t: (b, 0, t)),
            # left halo: 128 columns ending at the tile start (clamped; masked at t==0)
            pl.BlockSpec((1, C, HALO),
                         lambda b, t: (b, 0, jnp.maximum(t * blk - 1, 0))),
            # right halo: 128 columns starting at the tile end (clamped; masked at t==last)
            pl.BlockSpec((1, C, HALO),
                         lambda b, t: (b, 0, jnp.minimum((t + 1) * blk, n_blk - 1))),
            # conv weight, resident
            pl.BlockSpec((2, KERNEL_SIZE), lambda b, t: (0, 0)),
        ],
        out_specs=pl.BlockSpec((1, C, tl), lambda b, t: (b, 0, t)),
        compiler_params=pltpu.CompilerParams(
            dimension_semantics=("parallel", "parallel")),
    )(x_p, x_p, x_p, w)

    return out_p[:, :, :L] if lp != L else out_p


def spatial_attention_ref(x, w):
    # Pure-JAX reference mirroring the PyTorch forward.
    avg = jnp.mean(x, axis=1, keepdims=True)
    mx = jnp.max(x, axis=1, keepdims=True)
    concat = jnp.concatenate([avg, mx], axis=1)                  # (N, 2, L)
    out = lax.conv_general_dilated(
        concat, w.reshape(1, 2, KERNEL_SIZE),
        window_strides=(1,), padding=[(PAD, PAD)],
        dimension_numbers=("NCH", "OIH", "NCH"))                 # (N, 1, L)
    return x * jax.nn.sigmoid(out)


if __name__ == "__main__":
    key = jax.random.PRNGKey(0)
    kx, kw, kx2 = jax.random.split(key, 3)

    # Small shapes consistent with the module's (N, C, L) Conv1d layout.
    N, C, L = 2, 4, 16
    x = jax.random.normal(kx, (N, C, L), dtype=jnp.float32)
    # Deterministic stand-in for nn.Conv1d(2, 1, 7, bias=False).weight squeezed to (2, 7).
    w = jax.random.normal(kw, (2, KERNEL_SIZE), dtype=jnp.float32) * 0.1

    out = jax.block_until_ready(spatial_attention(x, w))
    ref = spatial_attention_ref(x, w)
    assert jnp.allclose(out, ref, atol=1e-5, rtol=1e-5), "mismatch (single tile)"

    # Multi-tile path: exercises cross-tile halos and edge masking.
    N2, C2, L2 = 2, 8, 300
    x2 = jax.random.normal(kx2, (N2, C2, L2), dtype=jnp.float32)
    out2 = jax.block_until_ready(spatial_attention(x2, w, tile_l=128))
    ref2 = spatial_attention_ref(x2, w)
    assert jnp.allclose(out2, ref2, atol=1e-5, rtol=1e-5), "mismatch (multi tile)"

    print("KERNEL_OK")
</pallas_src>

<mosaic_0001>
module attributes {stable_mosaic.version = 11 : i64} {
  func.func @_fused_kernel(%arg0: i32, %arg1: i32, %arg2: memref<1x4x128xf32, #tpu.memory_space<vmem>>, %arg3: memref<1x4x128xf32, #tpu.memory_space<vmem>>, %arg4: memref<1x4x128xf32, #tpu.memory_space<vmem>>, %arg5: memref<2x7xf32, #tpu.memory_space<vmem>>, %arg6: memref<1x4x128xf32, #tpu.memory_space<vmem>>) attributes {dimension_semantics = [#tpu.dimension_semantics<parallel>, #tpu.dimension_semantics<parallel>], iteration_bounds = array<i64: 2, 1>, scalar_prefetch = 0 : i64, scratch_operands = 0 : i64, tpu.core_type = #tpu.core_type<tc>, window_params = [{transform_indices = @transform_0, window_bounds = array<i64: 1, 4, 128>}, {transform_indices = @transform_1, window_bounds = array<i64: 1, 4, 128>}, {transform_indices = @transform_2, window_bounds = array<i64: 1, 4, 128>}, {pipeline_mode = #tpu.pipeline_mode<synchronous>, transform_indices = @transform_3, window_bounds = array<i64: 2, 7>}, {transform_indices = @transform_4, window_bounds = array<i64: 1, 4, 128>}]} {
    %c0 = arith.constant 0 : index
    %c0_0 = arith.constant 0 : index
    %c0_1 = arith.constant 0 : index
    %0 = vector.load %arg2[%c0, %c0_0, %c0_1] : memref<1x4x128xf32, #tpu.memory_space<vmem>>, vector<1x4x128xf32>
    %1 = vector.shape_cast %0 : vector<1x4x128xf32> to vector<4x128xf32>
    %c0_2 = arith.constant 0 : index
    %c0_3 = arith.constant 0 : index
    %c0_4 = arith.constant 0 : index
    %2 = vector.load %arg3[%c0_2, %c0_3, %c0_4] : memref<1x4x128xf32, #tpu.memory_space<vmem>>, vector<1x4x128xf32>
    %3 = vector.shape_cast %2 : vector<1x4x128xf32> to vector<4x128xf32>
    %c0_5 = arith.constant 0 : index
    %c0_6 = arith.constant 0 : index
    %c0_7 = arith.constant 0 : index
    %4 = vector.load %arg4[%c0_5, %c0_6, %c0_7] : memref<1x4x128xf32, #tpu.memory_space<vmem>>, vector<1x4x128xf32>
    %5 = vector.shape_cast %4 : vector<1x4x128xf32> to vector<4x128xf32>
    %cst = arith.constant dense<0.000000e+00> : vector<128xf32>
    %6 = vector.multi_reduction <add>, %1, %cst [0] : vector<4x128xf32> to vector<128xf32>
    %7 = vector.shape_cast %6 : vector<128xf32> to vector<1x128xf32>
    %cst_8 = arith.constant 4.000000e+00 : f32
    %8 = vector.broadcast %cst_8 : f32 to vector<1x128xf32>
    %9 = arith.divf %7, %8 : vector<1x128xf32>
    %cst_9 = arith.constant dense<0xFF800000> : vector<128xf32>
    %10 = vector.multi_reduction <maximumf>, %1, %cst_9 [0] : vector<4x128xf32> to vector<128xf32>
    %11 = vector.shape_cast %10 : vector<128xf32> to vector<1x128xf32>
    %12 = tpu.concatenate %9, %11 in 0 : vector<1x128xf32>, vector<1x128xf32> -> vector<2x128xf32>
    %13 = vector.extract_strided_slice %3 {offsets = [0, 125], sizes = [4, 3], strides = [1, 1]} : vector<4x128xf32> to vector<4x3xf32>
    %cst_10 = arith.constant dense<0.000000e+00> : vector<3xf32>
    %14 = vector.multi_reduction <add>, %13, %cst_10 [0] : vector<4x3xf32> to vector<3xf32>
    %15 = vector.shape_cast %14 : vector<3xf32> to vector<1x3xf32>
    %cst_11 = arith.constant 4.000000e+00 : f32
    %16 = vector.broadcast %cst_11 : f32 to vector<1x3xf32>
    %17 = arith.divf %15, %16 : vector<1x3xf32>
    %cst_12 = arith.constant dense<0xFF800000> : vector<3xf32>
    %18 = vector.multi_reduction <maximumf>, %13, %cst_12 [0] : vector<4x3xf32> to vector<3xf32>
    %19 = vector.shape_cast %18 : vector<3xf32> to vector<1x3xf32>
    %20 = tpu.concatenate %17, %19 in 0 : vector<1x3xf32>, vector<1x3xf32> -> vector<2x3xf32>
    %21 = vector.extract_strided_slice %5 {offsets = [0, 0], sizes = [4, 3], strides = [1, 1]} : vector<4x128xf32> to vector<4x3xf32>
    %cst_13 = arith.constant dense<0.000000e+00> : vector<3xf32>
    %22 = vector.multi_reduction <add>, %21, %cst_13 [0] : vector<4x3xf32> to vector<3xf32>
    %23 = vector.shape_cast %22 : vector<3xf32> to vector<1x3xf32>
    %cst_14 = arith.constant 4.000000e+00 : f32
    %24 = vector.broadcast %cst_14 : f32 to vector<1x3xf32>
    %25 = arith.divf %23, %24 : vector<1x3xf32>
    %cst_15 = arith.constant dense<0xFF800000> : vector<3xf32>
    %26 = vector.multi_reduction <maximumf>, %21, %cst_15 [0] : vector<4x3xf32> to vector<3xf32>
    %27 = vector.shape_cast %26 : vector<3xf32> to vector<1x3xf32>
    %28 = tpu.concatenate %25, %27 in 0 : vector<1x3xf32>, vector<1x3xf32> -> vector<2x3xf32>
    %c0_i32 = arith.constant 0 : i32
    %29 = arith.cmpi eq, %arg1, %c0_i32 : i32
    %cst_16 = arith.constant 0.000000e+00 : f32
    %30 = vector.broadcast %cst_16 : f32 to vector<2x3xf32>
    %31 = arith.select %29, %30, %20 : vector<2x3xf32>
    %c0_i32_17 = arith.constant 0 : i32
    %32 = arith.cmpi eq, %arg1, %c0_i32_17 : i32
    %cst_18 = arith.constant 0.000000e+00 : f32
    %33 = vector.broadcast %cst_18 : f32 to vector<2x3xf32>
    %34 = arith.select %32, %33, %28 : vector<2x3xf32>
    %35 = tpu.concatenate %31, %12, %34 in 1 : vector<2x3xf32>, vector<2x128xf32>, vector<2x3xf32> -> vector<2x134xf32>
    %c0_19 = arith.constant 0 : index
    %c0_20 = arith.constant 0 : index
    %36 = vector.load %arg5[%c0_19, %c0_20] : memref<2x7xf32, #tpu.memory_space<vmem>>, vector<2x7xf32>
    %cst_21 = arith.constant 0.000000e+00 : f32
    %37 = vector.broadcast %cst_21 : f32 to vector<2x128xf32>
    %38 = vector.extract_strided_slice %35 {offsets = [0, 0], sizes = [2, 128], strides = [1, 1]} : vector<2x134xf32> to vector<2x128xf32>
    %39 = vector.extract_strided_slice %36 {offsets = [0, 0], sizes = [2, 1], strides = [1, 1]} : vector<2x7xf32> to vector<2x1xf32>
    %40 = vector.broadcast %39 : vector<2x1xf32> to vector<2x128xf32>
    %41 = arith.mulf %38, %40 : vector<2x128xf32>
    %42 = arith.addf %37, %41 : vector<2x128xf32>
    %43 = vector.extract_strided_slice %35 {offsets = [0, 1], sizes = [2, 128], strides = [1, 1]} : vector<2x134xf32> to vector<2x128xf32>
    %44 = vector.extract_strided_slice %36 {offsets = [0, 1], sizes = [2, 1], strides = [1, 1]} : vector<2x7xf32> to vector<2x1xf32>
    %45 = vector.broadcast %44 : vector<2x1xf32> to vector<2x128xf32>
    %46 = arith.mulf %43, %45 : vector<2x128xf32>
    %47 = arith.addf %42, %46 : vector<2x128xf32>
    %48 = vector.extract_strided_slice %35 {offsets = [0, 2], sizes = [2, 128], strides = [1, 1]} : vector<2x134xf32> to vector<2x128xf32>
    %49 = vector.extract_strided_slice %36 {offsets = [0, 2], sizes = [2, 1], strides = [1, 1]} : vector<2x7xf32> to vector<2x1xf32>
    %50 = vector.broadcast %49 : vector<2x1xf32> to vector<2x128xf32>
    %51 = arith.mulf %48, %50 : vector<2x128xf32>
    %52 = arith.addf %47, %51 : vector<2x128xf32>
    %53 = vector.extract_strided_slice %35 {offsets = [0, 3], sizes = [2, 128], strides = [1, 1]} : vector<2x134xf32> to vector<2x128xf32>
    %54 = vector.extract_strided_slice %36 {offsets = [0, 3], sizes = [2, 1], strides = [1, 1]} : vector<2x7xf32> to vector<2x1xf32>
    %55 = vector.broadcast %54 : vector<2x1xf32> to vector<2x128xf32>
    %56 = arith.mulf %53, %55 : vector<2x128xf32>
    %57 = arith.addf %52, %56 : vector<2x128xf32>
    %58 = vector.extract_strided_slice %35 {offsets = [0, 4], sizes = [2, 128], strides = [1, 1]} : vector<2x134xf32> to vector<2x128xf32>
    %59 = vector.extract_strided_slice %36 {offsets = [0, 4], sizes = [2, 1], strides = [1, 1]} : vector<2x7xf32> to vector<2x1xf32>
    %60 = vector.broadcast %59 : vector<2x1xf32> to vector<2x128xf32>
    %61 = arith.mulf %58, %60 : vector<2x128xf32>
    %62 = arith.addf %57, %61 : vector<2x128xf32>
    %63 = vector.extract_strided_slice %35 {offsets = [0, 5], sizes = [2, 128], strides = [1, 1]} : vector<2x134xf32> to vector<2x128xf32>
    %64 = vector.extract_strided_slice %36 {offsets = [0, 5], sizes = [2, 1], strides = [1, 1]} : vector<2x7xf32> to vector<2x1xf32>
    %65 = vector.broadcast %64 : vector<2x1xf32> to vector<2x128xf32>
    %66 = arith.mulf %63, %65 : vector<2x128xf32>
    %67 = arith.addf %62, %66 : vector<2x128xf32>
    %68 = vector.extract_strided_slice %35 {offsets = [0, 6], sizes = [2, 128], strides = [1, 1]} : vector<2x134xf32> to vector<2x128xf32>
    %69 = vector.extract_strided_slice %36 {offsets = [0, 6], sizes = [2, 1], strides = [1, 1]} : vector<2x7xf32> to vector<2x1xf32>
    %70 = vector.broadcast %69 : vector<2x1xf32> to vector<2x128xf32>
    %71 = arith.mulf %68, %70 : vector<2x128xf32>
    %72 = arith.addf %67, %71 : vector<2x128xf32>
    %cst_22 = arith.constant dense<0.000000e+00> : vector<128xf32>
    %73 = vector.multi_reduction <add>, %72, %cst_22 [0] : vector<2x128xf32> to vector<128xf32>
    %74 = vector.shape_cast %73 : vector<128xf32> to vector<1x128xf32>
    %75 = arith.negf %74 : vector<1x128xf32>
    %76 = math.exp %75 : vector<1x128xf32>
    %cst_23 = arith.constant 1.000000e+00 : f32
    %77 = vector.broadcast %cst_23 : f32 to vector<1x128xf32>
    %78 = arith.addf %77, %76 : vector<1x128xf32>
    %79 = arith.divf %77, %78 : vector<1x128xf32>
    %80 = vector.broadcast %79 : vector<1x128xf32> to vector<4x128xf32>
    %81 = arith.mulf %1, %80 : vector<4x128xf32>
    %c0_24 = arith.constant 0 : index
    %c0_25 = arith.constant 0 : index
    %c0_26 = arith.constant 0 : index
    %82 = vector.load %arg6[%c0_24, %c0_25, %c0_26] : memref<1x4x128xf32, #tpu.memory_space<vmem>>, vector<1x4x128xf32>
    %83 = vector.shape_cast %82 : vector<1x4x128xf32> to vector<4x128xf32>
    %84 = vector.shape_cast %81 : vector<4x128xf32> to vector<1x4x128xf32>
    tpu.vector_store %arg6[%c0_24, %c0_25, %c0_26], %84 {strides = array<i32>} : memref<1x4x128xf32, #tpu.memory_space<vmem>>, vector<1x4x128xf32>,
    return
  }
  func.func @transform_0(%arg0: i32, %arg1: i32) -> (i32, i32, i32) {
    %c0_i32 = arith.constant 0 : i32
    %c0_i32_0 = arith.constant 0 : i32
    return %arg0, %c0_i32, %arg1 : i32, i32, i32
  }
  func.func @transform_1(%arg0: i32, %arg1: i32) -> (i32, i32, i32) {
    %c1_i32 = arith.constant 1 : i32
    %0 = arith.muli %arg1, %c1_i32 : i32
    %c1_i32_0 = arith.constant 1 : i32
    %1 = arith.subi %0, %c1_i32_0 : i32
    %c0_i32 = arith.constant 0 : i32
    %2 = arith.maxsi %1, %c0_i32 : i32
    %c0_i32_1 = arith.constant 0 : i32
    %c0_i32_2 = arith.constant 0 : i32
    return %arg0, %c0_i32_1, %2 : i32, i32, i32
  }
  func.func @transform_2(%arg0: i32, %arg1: i32) -> (i32, i32, i32) {
    %c1_i32 = arith.constant 1 : i32
    %0 = arith.addi %arg1, %c1_i32 : i32
    %c1_i32_0 = arith.constant 1 : i32
    %1 = arith.muli %0, %c1_i32_0 : i32
    %c0_i32 = arith.constant 0 : i32
    %2 = arith.minsi %1, %c0_i32 : i32
    %c0_i32_1 = arith.constant 0 : i32
    %c0_i32_2 = arith.constant 0 : i32
    return %arg0, %c0_i32_1, %2 : i32, i32, i32
  }
  func.func @transform_3(%arg0: i32, %arg1: i32) -> (i32, i32) {
    %c0_i32 = arith.constant 0 : i32
    %c0_i32_0 = arith.constant 0 : i32
    %c0_i32_1 = arith.constant 0 : i32
    return %c0_i32, %c0_i32_0 : i32, i32
  }
  func.func @transform_4(%arg0: i32, %arg1: i32) -> (i32, i32, i32) {
    %c0_i32 = arith.constant 0 : i32
    %c0_i32_0 = arith.constant 0 : i32
    return %arg0, %c0_i32, %arg1 : i32, i32, i32
  }
}

</mosaic_0001>

<bundles_post_ra>
// kernel: tpu_custom_call.1
= control target key start
LH: loop header
LB: loop body
LE: loop exit
PB: predicated region body
PF: predicated region fallthrough
CT: control target
= control target key end

     0   :  { %s1207_s0 = inlined_call_operand.hbm [shape: f32[2,4,128], index: 0, kind: input, shape index: {}]   ;;  %s1208_s1 = inlined_call_operand.hbm [shape: f32[2,4,128], index: 1, kind: input, shape index: {}]   ;;  %s1209_s2 = inlined_call_operand.hbm [shape: f32[2,4,128], index: 2, kind: input, shape index: {}]   ;;  %s1210_s3 = inlined_call_operand.vmem [shape: f32[2,7], index: 3, kind: input, shape index: {}]   ;;  %s1211_s4 = inlined_call_operand.hbm [shape: f32[2,4,128], index: 4, kind: output, shape index: {}]  }
   0x1   :  { %1215 = sst [smem:[#allocation16_spill]] %s1208_s1 }
   0x2   :  { %9 = vsyncpa [#allocation3], 0 }
   0x3   :  { %11 = vsyncpa [#allocation3 + $0x1], 0 }
   0x4   :  { %12 = vsyncpa [#allocation6], 0 }
   0x5   :  { %14 = vsyncpa [#allocation6 + $0x1], 0 }
   0x6   :  { %15 = vsyncpa [#allocation4], 0 }
   0x7   :  { %17 = vsyncpa [#allocation4 + $0x1], 0  ;;  %s1041_s15 = smov 0   ;;  %s1043_s16 = smov 0  }
   0x8   :  { %s1045_s17 = smov 0   ;;  %s1047_s18 = smov 0  }
   0x9   :  { %s1049_s19 = smov 0   ;;  %s1051_s20 = smov 0  }
   0xa LB: > { %1216 = sst [smem:[#allocation12_spill]] %s986_s17  ;;  %s1072_s21 = sadd.s32 4294967295, %s998_s20   ;;  %s998_s20 = sphi %s1051_s20, %s23_s20   ;;  %s994_s19 = sphi %s1049_s19, %s1230_s19   ;;  %s990_s18 = sphi %s1047_s18, %s1229_s18   ;;  %s986_s17 = sphi %s1045_s17, %s1228_s17   ;;  %s982_s16 = sphi %s1043_s16, %s1232_s16   ;;  %s978_s15 = sphi %s1041_s15, %s1231_s15  }
   0xb   : > { %1217 = sst [smem:[#allocation13_spill]] %s994_s19  ;;  %s696_s22 = sadd.s32 4294967294, %s998_s20  }
   0xc   : > { %s35_s23 = sadd.s32 1, %s994_s19  ;;  %s44_s24 = sadd.s32 1, %s986_s17 }
   0xd   : > { %p37_p0 = scmp.ge.s32.totalorder %s35_s23, 2  ;;  %p51_p1 = scmp.ne.s32.totalorder %s986_s17, %s982_s16 }
   0xe   : > { %p52_p2 = scmp.eq.s32.totalorder %s998_s20, 0  ;;  %p57_p3 = scmp.ne.s32.totalorder %s982_s16, %s978_s15 }
   0xf   : > { %s1234_s23 = smov (%p37_p0, %s35_s23), 0  ;;  %p58_p5 = scmp.eq.s32.totalorder %s1072_s21, 0 }
  0x10   : > { %1218 = sst [smem:[#allocation14_spill]] %s1234_s23  ;;  %p1084_p4 = por %p52_p2, %p51_p1 }
  0x11   : > { %s39_s26 = ssub.s32 %s994_s19, %s1234_s23  ;;  %p172_p6 = scmp.eq.s32.totalorder %s1072_s21, 1 }
  0x12   : > { %p42_p7 = scmp.eq.s32.totalorder %s39_s26, 0  ;;  %p1092_p8 = por %p58_p5, %p57_p3 }
  0x13   : > { %p1096_p9 = por %p172_p6, %p51_p1  ;;  %p178_p10 = scmp.eq.s32.totalorder %s696_s22, 1 }
  0x14   : > { %s1101_s29 = scalar_select %p42_p7, %s986_s17, %s44_s24  }
  0x15   : > { %p1103_p11 = por %p178_p10, %p57_p3  ;;  %p698_p12 = scmp.ge.s32.totalorder %s998_s20, 2 }
  0x16   : > { %1222 = sst [smem:[#allocation15_spill]] %s1101_s29  ;;  %p737_p13 = scmp.lt.s32.totalorder %s998_s20, 2 }
  0x17   : > { %s201_s5 = sand.u32 1, %s986_s17   ;;  %s700_s7 = sshll.u32 %s994_s19, 2 }
  0x18   : > { %s699_s6 = sshll.u32 %s201_s5, 2  ;;  %p1113_p0 = pnand %p737_p13, %p1084_p4 }
  0x19   : > { %s221_s9 = sand.u32 1, %s998_s20   ;;  %s1225_s1 = sld [smem:[#allocation16_spill]] }
  0x1a   : > { %s225_s14 = scalar_lea.vmem [#allocation5], %s699_s6  ;;  %s222_s24 = scalar_lea.sflag [#allocation6], %s221_s9 }
  0x1b   : > { %s237_s22 = sshll.u32 %s225_s14, 4  ;;  %p705_p1 = scmp.ge.s32.totalorder %s998_s20, 1  ;;  %s238_s22 = int_to_ptr.vmem [resolvable:$true] %s237_s22 }
  0x1c   : > { %p265_p2 = scmp.lt.s32.totalorder %s998_s20, 3  ;;  %s210_s10 = scalar_lea.hbm %s1207_s0, %s700_s7 }
  0x1d   : > { %s212_s11 = sshll.u32 %s210_s10, 4  ;;  %s202_s14 = scalar_lea.sflag [#allocation3], %s201_s5  ;;  %s213_s11 = int_to_ptr.hbm [resolvable:$true] %s212_s11 }
  0x1e   : > { %p1125_p3 = pnand %p705_p1, %p265_p2  ;;  %s248_s29 = scalar_lea.vmem [#allocation7], %s699_s6 }
  0x1f   : > { %s233_s12 = scalar_lea.hbm %s1225_s1, %s700_s7  ;;  %s260_s17 = sshll.u32 %s248_s29, 4  ;;  %s261_s17 = int_to_ptr.vmem [resolvable:$true] %s260_s17 }
  0x20   : > { %s235_s13 = sshll.u32 %s233_s12, 4  ;;  %s205_s12 = scalar_lea.vmem [#allocation2], %s699_s6  ;;  %s236_s13 = int_to_ptr.hbm [resolvable:$true] %s235_s13 }
  0x21   : > { %729 = dma.hbm_to_vmem [thread:$0]  (!%p1113_p0), %s236_s13, 64, %s238_s22, %s222_s24  }
  0x22   : > { %s214_s1 = sshll.u32 %s205_s12, 4  ;;  %s256_s22 = scalar_lea.hbm %s1209_s2, %s700_s7  ;;  %s215_s1 = int_to_ptr.vmem [resolvable:$true] %s214_s1 }
  0x23   : > { %726 = dma.hbm_to_vmem [thread:$0]  (!%p1113_p0), %s213_s11, 64, %s215_s1, %s202_s14  }
  0x24   : > { %s258_s19 = sshll.u32 %s256_s22, 4  ;;  %269 = sbr.rel (%p1125_p3) target bundleno = 374 (0x176), region = 36  ;;  %s259_s19 = int_to_ptr.hbm [resolvable:$true] %s258_s19 }
  0x25   : > { %732 = dma.hbm_to_vmem [thread:$0]  (!%p1113_p0), %s259_s19, 64, %s261_s17, %s222_s24  }
  0x26   : > { %s1142_s23 = sand.u32 (!%p1125_p3), 1, %s982_s16  }
  0x27   : > { %s706_s1 = sshll.u32 (!%p1125_p3), %s1142_s23, 2  ;;  %s272_s5 = scalar_lea.sflag (!%p1125_p3), [#allocation3], %s1142_s23 }
  0x28   : > { %s275_s7 = scalar_lea.vmem (!%p1125_p3), [#allocation2], %s706_s1 }
  0x29   : > { %965 = dma.done.wait (%p1092_p8), %s272_s5, 64  }
  0x2a   : > { %967 = vsyncadd (%p1092_p8), %s272_s5, 4294967232  ;;  %s281_s17 = sand.u32 1, %s1072_s21  }
  0x2b   : > { %s282_s19 = scalar_lea.sflag [#allocation6], %s281_s17 }
  0x2c   : > { %969 = dma.done.wait (%p1092_p8), %s282_s19, 128  }
  0x2d   : > { %971 = vsyncadd (%p1092_p8), %s282_s19, 4294967168  ;;  %v1000_v0 = vmov 1   ;;  %v1001_v1 = vmov 4.0   ;;  %v1002_v2 = vmov 0.0   ;;  %s1003_s29 = smov 3   ;;  %v1004_v3 = vmov 3  }
  0x2e   : > { %808 = vset.pattern.permute.xlu1 %v1000_v0  ;;  %816 = vrcp.f32 %v1001_v1  ;;  %804 = vrot.lane.b32.xlu0 %v1002_v2, %s1003_s29  ;;  %v1005_v4 = vmov 5   ;;  %vm340_vm0 = vcmask 1043456   ;;  %v420_v5 = vld [vmem:[%s1210_s3] sm:$0x3]  ;;  %v1006_v22 = vmov 2   ;;  %s1010_s27 = smov 127  }
  0x2f   : > { %810 = vset.pattern.permute.xlu2 %v1004_v3  ;;  %812 = vset.pattern.permute.xlu0 %v1005_v4  ;;  %v1161_v6 = vld [vmem:[%s275_s7] sm:$0xf]  ;;  %v1007_v23 = vmov 4   ;;  %vm363_vm2 = vcmask 1040384   ;;  %v1008_v31 = vmov 6   ;;  %v1009_v32 = vmov 0  }
  0x30   : > { %429 = vperm.xlu1 %808, %v420_v5   ;;  %v341_v8 = vsel %vm340_vm0, %v1161_v6, 0.0  ;;  %v356_v9 = vsel %vm340_vm0, %v1161_v6, -inf  ;;  %461 = vperm.xlu2 %810, %v420_v5   ;;  %vm417_vm3 = vcmask 23552   ;;  %s1011_s8 = smov 126   ;;  %s1012_s24 = smov 125   ;;  %vm440_vm4 = vcmask 1039360  }
  0x31   : > { %v342_v10 = vrot.slane %v341_v8, 4  ;;  %v357_v12 = vrot.slane %v356_v9, 4  ;;  %s1013_s25 = smov 124   ;;  %s1014_s26 = smov 123   ;;  %vm456_vm5 = vcmask 1031168   ;;  %vm472_vm6 = vcmask 1022976  }
  0x32   : > { %s1015_s10 = smov 122   ;;  %vm488_vm7 = vcmask 1014784   ;;  %vm504_vm8 = vcmask 1006592   ;;  %vm520_vm9 = vcmask 998400   ;;  %vm524_vm10 = vcmask 1041408   ;;  %s712_s11 = sshll.u32 %s990_s18, 2 }
  0x33   : > { %v343_v13 = vadd.f32 %v342_v10, %v341_v8  ;;  %v358_v15 = vmax.f32 %v356_v9, %v357_v12  ;;  %s565_s9 = scalar_lea.hbm %s1211_s4, %s712_s11  ;;  %s330_s13 = scalar_lea.vmem [#allocation8], %s706_s1 }
  0x34   : > { %v817_v7 = vpop.eup %816  ;;  %s567_s22 = sshll.u32 %s330_s13, 4  ;;  %s569_s5 = sshll.u32 %s565_s9, 4  ;;  %s568_s22 = int_to_ptr.vmem [resolvable:$true] %s567_s22  ;;  %s570_s5 = int_to_ptr.hbm [resolvable:$true] %s569_s5 }
  0x35   : > { %v349_v11 = vmul.f32 4.0, %v817_v7  ;;  %v344_v16 = vrot.slane %v343_v13, 2  ;;  %v359_v18 = vrot.slane %v358_v15, 2  ;;  %vm353_vm1 = vweird.f32 %v817_v7  ;;  %s554_s18 = scalar_lea.sflag [#allocation4], %s1142_s23  ;;  %s926_s7 = sshra.s32 %s570_s5, 4  ;;  %s927_s7 = int_to_ptr.hbm [resolvable:$true] %s926_s7 }
  0x36   : > { %s928_s17 = scalar_lea.hbm %s927_s7, 4  ;;  %p933_p7 = scmp.lt.s32.totalorder %s927_s7, %s1211_s4 }
  0x37   : > { %v350_v14 = vsub.f32 1.0, %v349_v11  ;;  %v345_v19 = vadd.f32 %v344_v16, %v343_v13  ;;  %v360_v21 = vmax.f32 %v358_v15, %v359_v18  ;;  %p929_p4 = scmp.ne.s32.totalorder %s927_s7, %s928_s17 }
  0x38   : > { %809 = vset.pattern.permute.xlu1 %v1006_v22  ;;  %811 = vset.pattern.permute.xlu2 %v1007_v23 }
  0x39   : > { %v351_v17 = vmul.f32 %v817_v7, %v350_v14  ;;  %445 = vperm.xlu1 %809, %v420_v5   ;;  %v346_v24 = vrot.slane %v345_v19, 1  ;;  %v361_v25 = vrot.slane %v360_v21, 1  ;;  %477 = vperm.xlu2 %811, %v420_v5   ;;  %p930_p5 = pnand %p929_p4, %p1096_p9 }
  0x3b   : > { %v352_v20 = vadd.f32 %v817_v7, %v351_v17  ;;  %v347_v27 = vadd.f32 %v346_v24, %v345_v19  ;;  %v362_v28 = vmax.f32 %v360_v21, %v361_v25  ;;  %p931_p6 = pneg %p930_p5 }
  0x3d   : > { %v354_v26 = vsel %vm353_vm1, %v817_v7, %v352_v20 }
  0x3e   : > { %v355_v29 = vmul.f32 %v354_v26, %v347_v27 }
  0x40   : > { %v364_v30 = vsel %vm363_vm2, %v355_v29, %v362_v28 }
  0x41   : > { %410 = vrot.lane.b32.xlu0 %v364_v30, %s1003_s29  ;;  %813 = vset.pattern.permute.xlu1 %v1008_v31  ;;  %s932_s29 = scalar_lea.hbm %s1211_s4, 8 }
  0x42   : > { %814 = vset.pattern.permute.xlu2 %v1009_v32  ;;  %509 = vperm.xlu1 %813, %v420_v5   ;;  %p934_p8 = scmp.lt.s32.totalorder %s932_s29, %s928_s17 }
  0x43   : > { %423 = vperm.xlu2 %814, %v420_v5  }
  0x44   : > { %p935_p10 = por %p934_p8, %p933_p7 }
  0x46   : > { %p936_p13 = pnand %p935_p10, %p931_p6 }
  0x49   : > { %493 = vperm.xlu0 %812, %v420_v5  }
  0x51   : > { %815 = vset.pattern.permute.xlu0 %v1008_v31 }
  0x8a   : > { %v462_v44 = vpop.permute.xlu2 %461 }
  0x93   : > { %v478_v49 = vpop.permute.xlu2 %477 }
  0x9d   : > { %v424_v57 = vpop.permute.xlu2 %423 }
  0xa0   : > { %v805_v33 = vpop.permute.xlu0 %804 }
  0xa1   : > { %v807_v35 = vunpack.i.h.bf16 %v805_v33  ;;  %v806_v36 = vunpack.i.l.bf16 %v805_v33 }
  0xa2   : > { %v430_v34 = vpop.permute.xlu1 %429 }
  0xab   : > { %v446_v38 = vpop.permute.xlu1 %445 }
  0xb3   : > { %v411_v37 = vpop.permute.xlu0 %410 }
  0xb4   : > { %v418_v39 = vsel %vm417_vm3, %v806_v36, %v411_v37  ;;  %v419_v40 = vsel %vm417_vm3, %v411_v37, %v807_v35  ;;  %v510_v53 = vpop.permute.xlu1 %509 }
  0xb5   : > { %v433_v41 = vmul.f32 %v430_v34, %v419_v40  ;;  %v448_v42 = vmul.f32 %v446_v38, %v418_v39  ;;  %v432_v43 = vmul.f32 %v430_v34, %v418_v39  ;;  %v464_v45 = vmul.f32 %v462_v44, %v418_v39 }
  0xb6   : > { %v465_v46 = vmul.f32 %v462_v44, %v419_v40  ;;  %v449_v47 = vmul.f32 %v446_v38, %v419_v40  ;;  %v481_v51 = vmul.f32 %v478_v49, %v419_v40  ;;  %v480_v52 = vmul.f32 %v478_v49, %v418_v39 }
  0xb7   : > { %438 = vrot.lane.b32.xlu2 %v433_v41, %s1010_s27  ;;  %452 = vrot.lane.b32.xlu0 %v448_v42, %s1011_s8  ;;  %v512_v54 = vmul.f32 %v510_v53, %v418_v39  ;;  %v513_v55 = vmul.f32 %v510_v53, %v419_v40  ;;  %v426_v1 = vmul.f32 %v424_v57, %v418_v39 }
  0xb8   : > { %436 = vrot.lane.b32.xlu1 %v432_v43, %s1010_s27 }
  0xbb   : > { %v494_v48 = vpop.permute.xlu0 %493 }
  0xbc   : > { %v496_v50 = vmul.f32 %v494_v48, %v418_v39  ;;  %v497_v56 = vmul.f32 %v494_v48, %v419_v40 }
  0xbf   : > { %468 = vrot.lane.b32.xlu2 %v464_v45, %s1012_s24  ;;  %470 = vrot.lane.b32.xlu0 %v465_v46, %s1012_s24 }
  0xc0   : > { %454 = vrot.lane.b32.xlu1 %v449_v47, %s1011_s8 }
  0xc7   : > { %486 = vrot.lane.b32.xlu2 %v481_v51, %s1013_s25  ;;  %500 = vrot.lane.b32.xlu0 %v496_v50, %s1014_s26 }
  0xc8   : > { %484 = vrot.lane.b32.xlu1 %v480_v52, %s1013_s25 }
  0xcf   : > { %516 = vrot.lane.b32.xlu2 %v512_v54, %s1015_s10  ;;  %518 = vrot.lane.b32.xlu0 %v513_v55, %s1015_s10 }
  0xd0   : > { %502 = vrot.lane.b32.xlu1 %v497_v56, %s1014_s26 }
 0x111   : > { %v439_v58 = vpop.permute.xlu2 %438 }
 0x119   : > { %v469_v61 = vpop.permute.xlu2 %468 }
 0x121   : > { %v487_v4 = vpop.permute.xlu2 %486 }
 0x129   : > { %v453_v59 = vpop.permute.xlu0 %452  ;;  %v517_v16 = vpop.permute.xlu2 %516 }
 0x12a   : > { %v437_v60 = vpop.permute.xlu1 %436 }
 0x12b   : > { %v441_v0 = vsel %vm440_vm4, %v437_v60, %v439_v58 }
 0x12c   : > { %v443_v5 = vadd.f32 %v441_v0, %v426_v1 }
 0x131   : > { %v471_v62 = vpop.permute.xlu0 %470 }
 0x132   : > { %v455_v63 = vpop.permute.xlu1 %454  ;;  %v473_v9 = vsel %vm472_vm6, %v469_v61, %v471_v62 }
 0x133   : > { %v457_v2 = vsel %vm456_vm5, %v453_v59, %v455_v63 }
 0x134   : > { %v459_v8 = vadd.f32 %v457_v2, %v443_v5 }
 0x136   : > { %v475_v11 = vadd.f32 %v473_v9, %v459_v8 }
 0x139   : > { %v501_v3 = vpop.permute.xlu0 %500 }
 0x13a   : > { %v485_v7 = vpop.permute.xlu1 %484 }
 0x13b   : > { %v489_v10 = vsel %vm488_vm7, %v485_v7, %v487_v4 }
 0x13c   : > { %v491_v12 = vadd.f32 %v489_v10, %v475_v11 }
 0x141   : > { %v519_v14 = vpop.permute.xlu0 %518 }
 0x142   : > { %v503_v13 = vpop.permute.xlu1 %502  ;;  %v521_v18 = vsel %vm520_vm9, %v517_v16, %v519_v14 }
 0x143   : > { %v505_v15 = vsel %vm504_vm8, %v501_v3, %v503_v13 }
 0x144   : > { %v507_v17 = vadd.f32 %v505_v15, %v491_v12 }
 0x146   : > { %v523_v19 = vadd.f32 %v521_v18, %v507_v17 }
 0x148   : > { %v525_v20 = vsel %vm524_vm10, %v523_v19, 0.0 }
 0x149   : > { %v526_v21 = vrot.slane %v525_v20, 4 }
 0x14b   : > { %v527_v22 = vadd.f32 %v526_v21, %v525_v20 }
 0x14d   : > { %v528_v23 = vrot.slane %v527_v22, 2 }
 0x14f   : > { %v529_v24 = vadd.f32 %v528_v23, %v527_v22 }
 0x151   : > { %v530_v25 = vrot.slane %v529_v24, 1 }
 0x153   : > { %v531_v26 = vadd.f32 %v530_v25, %v529_v24 }
 0x155   : > { %v710_v27 = vmul.f32 -1.442695, %v531_v26 }
 0x157   : > { %818 = vpow2.f32 %v710_v27 }
 0x15d   : > { %v819_v28 = vpop.eup %818 }
 0x15e   : > { %v535_v29 = vadd.f32 1.0, %v819_v28 }
 0x160   : > { %820 = vrcp.f32 %v535_v29  ;;  %v547_v33 = vand.u32 2147483648, %v535_v29  ;;  %v545_v35 = vand.u32 2147483647, %v535_v29  ;;  %vm541_vm12 = vweird.f32 %v535_v29 }
 0x162   : > { %v548_v37 = vor.u32 1.1754944e-38, %v547_v33  ;;  %vm546_vm14 = vcmp.eq.f32.partialorder %v545_v35, 8.507059e+37 }
 0x166   : > { %v821_v30 = vpop.eup %820 }
 0x167   : > { %v537_v31 = vmul.f32 %v821_v30, %v535_v29  ;;  %vm542_vm11 = vweird.f32 %v821_v30 }
 0x168   : > { %vm543_vm13 = vmor %vm541_vm12, %vm542_vm11 }
 0x169   : > { %v538_v32 = vsub.f32 1.0, %v537_v31 }
 0x16b   : > { %v539_v34 = vmul.f32 %v821_v30, %v538_v32 }
 0x16d   : > { %v540_v36 = vadd.f32 %v821_v30, %v539_v34 }
 0x16f   : > { %v544_v38 = vsel %vm543_vm13, %v821_v30, %v540_v36 }
 0x170   : > { %v549_v39 = vsel %vm546_vm14, %v548_v37, %v544_v38 }
 0x171   : > { %v551_v40 = vmul.f32 %v549_v39, %v1161_v6 }
 0x173   : > { %552 = vst [vmem:[%s330_s13] sm:$0xf] %v551_v40 }
 0x174   : > { %939 = shalt.err (!%p936_p13)
}
 0x175   : > { %721 = dma.vmem_to_hbm [thread:$0]  (%p1096_p9), %s568_s22, 64, %s570_s5, %s554_s18  }
 0x176 PF: > { %s581_s23 = sand.u32 1, %s978_s15   ;;  %p734_p0 = pnand %p698_p12, %p1103_p11 }
 0x177   : > { %s582_s27 = scalar_lea.sflag [#allocation4], %s581_s23 }
 0x178   : > { %p735_p1 = pneg %p734_p0 }
 0x17a   : > { %973 = dma.done.wait (%p735_p1), %s582_s27, 64  }
 0x17b   : > { %975 = vsyncadd (%p735_p1), %s582_s27, 4294967232  ;;  %s23_s20 = sadd.s32 1, %s998_s20   ;;  %s1227_s8 = sld [smem:[#allocation12_spill]] }
 0x17c   : > { %p20_p2 = scmp.ge.s32.totalorder %s23_s20, 4   ;;  %s1228_s17 = sld [smem:[#allocation15_spill]] }
 0x17d   : > { %s1229_s18 = sld [smem:[#allocation13_spill]]  ;;  %s1231_s15 = smov %s982_s16 }
 0x17e   : > { %s1230_s19 = sld [smem:[#allocation14_spill]]  ;;  %22 = sbr.rel (!%p20_p2) target bundleno = 10 (0xa), region = 105 }
 0x181   : > { %s1232_s16 = smov %s1227_s8 }
 0x183   :  { %588 = vsyncpa [#allocation3], 1 }
 0x184   :  { %590 = vsyncpa [#allocation3 + $0x1], 1 }
 0x185   :  { %591 = vsyncpa [#allocation6], 1 }
 0x186   :  { %593 = vsyncpa [#allocation6 + $0x1], 1 }
 0x187   :  { %594 = vsyncpa [#allocation4], 1 }
 0x188   :  { %596 = vsyncpa [#allocation4 + $0x1], 1 }

</bundles_post_ra>
